<compile_context>
chip_gen: v7x
topology: tpu7x:2x2x1
jax: 0.10.0
libtpu: 0.0.40
codegen_flags: <defaults>
</compile_context>

<pallas_src>
import numpy as np
import jax
import jax.numpy as jnp
from jax.experimental import pallas as pl
from jax.experimental.pallas import tpu as pltpu

SELU_ALPHA = 1.6732632423543772848170429916717
SELU_SCALE = 1.0507009873554804934193349852946
BN_EPS = 1e-5


# ---------------------------------------------------------------------------
# In-kernel helpers
# ---------------------------------------------------------------------------
def _selu(y):
    # exp of the clamped value so the unused branch never produces inf.
    neg = SELU_ALPHA * (jnp.exp(jnp.minimum(y, 0.0)) - 1.0)
    return SELU_SCALE * jnp.where(y > 0.0, y, neg)


def make_stem_kernel(k, stride, nb, c_in, seg_len, widths):
    """Fused 3-layer stem kernel operating on nb samples per grid step.

    Activations live as 2-D (channels, nb*seg_len) tiles: per-sample segments of
    width seg_len laid out along the lane axis.  Layer 1 runs at stride 1 (fine
    rate); layers 2/3 use dilation=`stride` taps; the stride-s subsampling of
    the final output happens in the wrapper.  Cross-segment "garbage" columns
    never feed valid output columns (taps of valid columns stay inside their
    own segment) and are always finite, so they are simply discarded.
    """
    a1, a2, a3 = widths  # fine-rate widths after layers 1, 2, 3

    def conv_layer(act, a_out, dil, w_ref, b_ref):
        # act: (c_prev, a_in).  Stack the K taps along sublanes -> ONE MXU dot.
        taps = [act[:, dil * kk: dil * kk + a_out] for kk in range(k)]
        rhs = taps[0] if k == 1 else jnp.concatenate(taps, axis=0)  # (k*c_prev, a_out)
        h = jnp.dot(w_ref[...], rhs, preferred_element_type=jnp.float32)
        return _selu(h + b_ref[...])  # bias (c_out, 1) broadcasts over lanes

    def kernel(x_ref, w1_ref, b1_ref, w2_ref, b2_ref, w3_ref, b3_ref, o_ref):
        xb = x_ref[...]                                   # (nb, c_in, seg_len)
        if nb == 1:
            act0 = xb.reshape(c_in, seg_len)              # trivial squeeze
        else:
            # fold the batch into the lane axis: (c_in, nb*seg_len)
            act0 = jnp.transpose(xb, (1, 0, 2)).reshape(c_in, nb * seg_len)

        h1 = conv_layer(act0, a1, 1, w1_ref, b1_ref)       # (c1, a1) fine rate
        h2 = conv_layer(h1, a2, stride, w2_ref, b2_ref)    # (c2, a2) dilated taps
        h3 = conv_layer(h2, a3, stride, w3_ref, b3_ref)    # (c3, a3) dilated taps

        o_ref[...] = h3.astype(o_ref.dtype)                # lane-dense store

    return kernel


# ---------------------------------------------------------------------------
# Wrapper: BN folding, batch blocking, single pallas_call, output extraction
# ---------------------------------------------------------------------------
def cnn_stem_block(x, params, *, samples_per_step=None):
    """CNNStemBlock.forward: conv1 (stride s) -> conv2 (stride 1) -> conv3 (stride 1).

    x: (N, C_in, L) float32
    params: 3 tuples of (w (C_out,C_in,K), b (C_out,), gamma, beta,
                         running_mean, running_var, stride)
    """
    n, c_in, length = x.shape
    k = params[0][0].shape[2]
    s1 = int(params[0][6])
    if int(params[1][6]) != 1 or int(params[2][6]) != 1:
        raise ValueError("layers 2/3 are stride-1 by spec")

    # True (strided, VALID) output lengths per layer.
    l1 = (length - k) // s1 + 1
    l2 = l1 - (k - 1)
    l3 = l2 - (k - 1)
    if min(l1, l2, l3) < 1:
        raise ValueError(
            f"input length {length} too short for kernel_size={k}, stride={s1}")

    # Fold eval-mode BatchNorm + conv bias into the weights:
    #   w' = w * gamma/sqrt(var+eps),  b' = (b - mean)*gamma/sqrt(var+eps) + beta
    # and pre-concatenate the K taps: (C_out, C_in, K) -> (C_out, K*C_in),
    # row index = kk*C_in + c (matches the in-kernel tap stacking order).
    folded = []
    for (w, b, gamma, beta, rmean, rvar, _s) in params:
        scale = gamma / jnp.sqrt(rvar + BN_EPS)
        w_f = w * scale[:, None, None]
        b_f = (b - rmean) * scale + beta
        w2d = jnp.transpose(w_f, (0, 2, 1)).reshape(w.shape[0], -1).astype(jnp.float32)
        folded.append((w2d, b_f.reshape(-1, 1).astype(jnp.float32)))
    c1 = params[0][0].shape[0]
    c2 = params[1][0].shape[0]
    c3 = params[2][0].shape[0]

    # ---- batch blocking: nb samples per grid step ----
    if samples_per_step is None:
        nb = max(1, (n + 1) // 2)  # keep >=2 grid steps when N>=2 (v7x: 2 TCs)
        # crude f32 footprint per sample (input + taps + activations); budget
        # well inside v7x's 64 MiB physical / 32 MiB scoped default.
        bytes_per_sample = 4 * length * (2 * c_in + (k + 2) * (c1 + c2 + c3))
        nb = min(nb, max(1, (24 << 20) // max(bytes_per_sample, 1)))
    else:
        nb = max(1, int(samples_per_step))
    grid_n = -(-n // nb)
    n_pad = grid_n * nb
    if n_pad != n:
        x = jnp.pad(x, ((0, n_pad - n), (0, 0), (0, 0)))
    x = x.astype(jnp.float32)

    # Fine-rate widths per grid step (batch flattened along lanes).
    a0 = nb * length
    a1 = a0 - (k - 1)
    a2 = a1 - s1 * (k - 1)
    a3 = a2 - s1 * (k - 1)

    kernel = make_stem_kernel(k, s1, nb, c_in, length, (a1, a2, a3))

    in_specs = [pl.BlockSpec((nb, c_in, length), lambda i: (i, 0, 0))]
    operands = [x]
    for (w2d, b2d) in folded:
        # Weight/bias blocks are constant across the grid (tiny; double-buffer
        # overhead is negligible at these channel counts).
        in_specs.append(pl.BlockSpec(w2d.shape, lambda i: (0, 0)))
        in_specs.append(pl.BlockSpec(b2d.shape, lambda i: (0, 0)))
        operands += [w2d, b2d]

    out_fine = pl.pallas_call(
        kernel,
        out_shape=jax.ShapeDtypeStruct((grid_n, c3, a3), jnp.float32),
        grid=(grid_n,),
        in_specs=in_specs,
        out_specs=pl.BlockSpec((None, c3, a3), lambda i: (i, 0, 0)),
        compiler_params=pltpu.CompilerParams(
            dimension_semantics=("parallel",)),
    )(*operands)

    # Extract the strided (valid) columns from the fine-rate output on the
    # tiny output tensor: local sample b, output pos j -> column b*length + s1*j.
    cols = (np.arange(nb)[:, None] * length + np.arange(l3)[None, :] * s1).reshape(-1)
    out = jnp.take(out_fine, jnp.asarray(cols, dtype=jnp.int32), axis=2)  # (G,c3,nb*l3)
    out = out.reshape(grid_n, c3, nb, l3).transpose(0, 2, 1, 3)           # (G,nb,c3,l3)
    return out.reshape(n_pad, c3, l3)[:n]


# ---------------------------------------------------------------------------
# Pure-JAX reference for validation
# ---------------------------------------------------------------------------
def _ref_block(x, w, b, gamma, beta, rmean, rvar, stride):
    y = jax.lax.conv_general_dilated(
        x, w, window_strides=(stride,), padding="VALID",
        dimension_numbers=("NCH", "OIH", "NCH"))
    y = y + b.reshape(1, -1, 1)
    y = (y - rmean.reshape(1, -1, 1)) * (
        gamma.reshape(1, -1, 1) / jnp.sqrt(rvar.reshape(1, -1, 1) + BN_EPS)
    ) + beta.reshape(1, -1, 1)
    return jax.nn.selu(y)


def _ref_stem(x, params):
    for (w, b, g, be, rm, rv, s) in params:
        x = _ref_block(x, w, b, g, be, rm, rv, s)
    return x


# ---------------------------------------------------------------------------
def _init_conv_block_params(key, c_in, c_out, k, stride):
    kw, kb, kg, kbe = jax.random.split(key, 4)
    fan = c_in * k
    bound = 1.0 / jnp.sqrt(fan)
    w = jax.random.uniform(kw, (c_out, c_in, k), jnp.float32, -bound, bound)
    b = jax.random.uniform(kb, (c_out,), jnp.float32, -bound, bound)
    gamma = 1.0 + 0.1 * jax.random.normal(kg, (c_out,), jnp.float32)
    beta = 0.1 * jax.random.normal(kbe, (c_out,), jnp.float32)
    rmean = jnp.zeros((c_out,), jnp.float32)   # fresh BatchNorm running stats
    rvar = jnp.ones((c_out,), jnp.float32)
    return (w, b, gamma, beta, rmean, rvar, stride)


if __name__ == "__main__":
    # Module config: CNNStemBlock(in_channels=4, out_channels=8, kernel_size=3, stride=2)
    in_channels, out_channels, kernel_size, stride = 4, 8, 3, 2
    batch, length = 2, 16

    key = jax.random.PRNGKey(0)
    kx, k1, k2, k3 = jax.random.split(key, 4)
    x = jax.random.normal(kx, (batch, in_channels, length), jnp.float32)

    params = (
        _init_conv_block_params(k1, in_channels, out_channels, kernel_size, stride),
        _init_conv_block_params(k2, out_channels, out_channels, kernel_size, 1),
        _init_conv_block_params(k3, out_channels, out_channels, kernel_size, 1),
    )

    out = jax.block_until_ready(cnn_stem_block(x, params))
    ref = jax.block_until_ready(_ref_stem(x, params))

    assert out.shape == ref.shape, (out.shape, ref.shape)
    err = float(jnp.max(jnp.abs(out - ref)))
    assert jnp.allclose(out, ref, atol=1e-4, rtol=1e-4), err
    print("KERNEL_OK")
</pallas_src>

<mosaic_0001>
module attributes {stable_mosaic.version = 11 : i64} {
  func.func @kernel(%arg0: i32, %arg1: memref<1x4x16xf32, #tpu.memory_space<vmem>>, %arg2: memref<8x12xf32, #tpu.memory_space<vmem>>, %arg3: memref<8x1xf32, #tpu.memory_space<vmem>>, %arg4: memref<8x24xf32, #tpu.memory_space<vmem>>, %arg5: memref<8x1xf32, #tpu.memory_space<vmem>>, %arg6: memref<8x24xf32, #tpu.memory_space<vmem>>, %arg7: memref<8x1xf32, #tpu.memory_space<vmem>>, %arg8: memref<1x8x6xf32, #tpu.memory_space<vmem>>) attributes {dimension_semantics = [#tpu.dimension_semantics<parallel>], iteration_bounds = array<i64: 2>, scalar_prefetch = 0 : i64, scratch_operands = 0 : i64, tpu.core_type = #tpu.core_type<tc>, window_params = [{transform_indices = @transform_0, window_bounds = array<i64: 1, 4, 16>}, {pipeline_mode = #tpu.pipeline_mode<synchronous>, transform_indices = @transform_1, window_bounds = array<i64: 8, 12>}, {pipeline_mode = #tpu.pipeline_mode<synchronous>, transform_indices = @transform_2, window_bounds = array<i64: 8, 1>}, {pipeline_mode = #tpu.pipeline_mode<synchronous>, transform_indices = @transform_3, window_bounds = array<i64: 8, 24>}, {pipeline_mode = #tpu.pipeline_mode<synchronous>, transform_indices = @transform_4, window_bounds = array<i64: 8, 1>}, {pipeline_mode = #tpu.pipeline_mode<synchronous>, transform_indices = @transform_5, window_bounds = array<i64: 8, 24>}, {pipeline_mode = #tpu.pipeline_mode<synchronous>, transform_indices = @transform_6, window_bounds = array<i64: 8, 1>}, {transform_indices = @transform_7, window_bounds = array<i64: 1, 8, 6>}]} {
    %c0 = arith.constant 0 : index
    %c0_0 = arith.constant 0 : index
    %c0_1 = arith.constant 0 : index
    %0 = vector.load %arg1[%c0, %c0_0, %c0_1] : memref<1x4x16xf32, #tpu.memory_space<vmem>>, vector<1x4x16xf32>
    %1 = vector.shape_cast %0 : vector<1x4x16xf32> to vector<4x16xf32>
    %2 = vector.extract_strided_slice %1 {offsets = [0, 0], sizes = [4, 14], strides = [1, 1]} : vector<4x16xf32> to vector<4x14xf32>
    %3 = vector.extract_strided_slice %1 {offsets = [0, 1], sizes = [4, 14], strides = [1, 1]} : vector<4x16xf32> to vector<4x14xf32>
    %4 = vector.extract_strided_slice %1 {offsets = [0, 2], sizes = [4, 14], strides = [1, 1]} : vector<4x16xf32> to vector<4x14xf32>
    %5 = tpu.concatenate %2, %3, %4 in 0 : vector<4x14xf32>, vector<4x14xf32>, vector<4x14xf32> -> vector<12x14xf32>
    %c0_2 = arith.constant 0 : index
    %c0_3 = arith.constant 0 : index
    %6 = vector.load %arg2[%c0_2, %c0_3] : memref<8x12xf32, #tpu.memory_space<vmem>>, vector<8x12xf32>
    %cst = arith.constant dense<0.000000e+00> : vector<8x14xf32>
    %7 = tpu.matmul %6, %5, %cst {dimension_numbers = #tpu.dot_dimension_numbers<[1], [0], [0], [1], [0, 0, 1, 1], [], []>} : vector<8x12xf32>, vector<12x14xf32>, vector<8x14xf32> -> vector<8x14xf32>
    %c0_4 = arith.constant 0 : index
    %c0_5 = arith.constant 0 : index
    %8 = vector.load %arg3[%c0_4, %c0_5] : memref<8x1xf32, #tpu.memory_space<vmem>>, vector<8x1xf32>
    %9 = vector.broadcast %8 : vector<8x1xf32> to vector<8x14xf32>
    %10 = arith.addf %7, %9 : vector<8x14xf32>
    %cst_6 = arith.constant 0.000000e+00 : f32
    %11 = vector.broadcast %cst_6 : f32 to vector<8x14xf32>
    %12 = arith.minimumf %10, %11 : vector<8x14xf32>
    %13 = math.exp %12 : vector<8x14xf32>
    %cst_7 = arith.constant 1.000000e+00 : f32
    %14 = vector.broadcast %cst_7 : f32 to vector<8x14xf32>
    %15 = arith.subf %13, %14 : vector<8x14xf32>
    %cst_8 = arith.constant 1.67326319 : f32
    %16 = vector.broadcast %cst_8 : f32 to vector<8x14xf32>
    %17 = arith.mulf %16, %15 : vector<8x14xf32>
    %cst_9 = arith.constant 0.000000e+00 : f32
    %18 = vector.broadcast %cst_9 : f32 to vector<8x14xf32>
    %19 = arith.cmpf ogt, %10, %18 : vector<8x14xf32>
    %20 = arith.select %19, %10, %17 : vector<8x14xi1>, vector<8x14xf32>
    %cst_10 = arith.constant 1.05070102 : f32
    %21 = vector.broadcast %cst_10 : f32 to vector<8x14xf32>
    %22 = arith.mulf %21, %20 : vector<8x14xf32>
    %23 = vector.extract_strided_slice %22 {offsets = [0, 0], sizes = [8, 10], strides = [1, 1]} : vector<8x14xf32> to vector<8x10xf32>
    %24 = vector.extract_strided_slice %22 {offsets = [0, 2], sizes = [8, 10], strides = [1, 1]} : vector<8x14xf32> to vector<8x10xf32>
    %25 = vector.extract_strided_slice %22 {offsets = [0, 4], sizes = [8, 10], strides = [1, 1]} : vector<8x14xf32> to vector<8x10xf32>
    %26 = tpu.concatenate %23, %24, %25 in 0 : vector<8x10xf32>, vector<8x10xf32>, vector<8x10xf32> -> vector<24x10xf32>
    %c0_11 = arith.constant 0 : index
    %c0_12 = arith.constant 0 : index
    %27 = vector.load %arg4[%c0_11, %c0_12] : memref<8x24xf32, #tpu.memory_space<vmem>>, vector<8x24xf32>
    %cst_13 = arith.constant dense<0.000000e+00> : vector<8x10xf32>
    %28 = tpu.matmul %27, %26, %cst_13 {dimension_numbers = #tpu.dot_dimension_numbers<[1], [0], [0], [1], [0, 0, 1, 1], [], []>} : vector<8x24xf32>, vector<24x10xf32>, vector<8x10xf32> -> vector<8x10xf32>
    %c0_14 = arith.constant 0 : index
    %c0_15 = arith.constant 0 : index
    %29 = vector.load %arg5[%c0_14, %c0_15] : memref<8x1xf32, #tpu.memory_space<vmem>>, vector<8x1xf32>
    %30 = vector.broadcast %29 : vector<8x1xf32> to vector<8x10xf32>
    %31 = arith.addf %28, %30 : vector<8x10xf32>
    %cst_16 = arith.constant 0.000000e+00 : f32
    %32 = vector.broadcast %cst_16 : f32 to vector<8x10xf32>
    %33 = arith.minimumf %31, %32 : vector<8x10xf32>
    %34 = math.exp %33 : vector<8x10xf32>
    %cst_17 = arith.constant 1.000000e+00 : f32
    %35 = vector.broadcast %cst_17 : f32 to vector<8x10xf32>
    %36 = arith.subf %34, %35 : vector<8x10xf32>
    %cst_18 = arith.constant 1.67326319 : f32
    %37 = vector.broadcast %cst_18 : f32 to vector<8x10xf32>
    %38 = arith.mulf %37, %36 : vector<8x10xf32>
    %cst_19 = arith.constant 0.000000e+00 : f32
    %39 = vector.broadcast %cst_19 : f32 to vector<8x10xf32>
    %40 = arith.cmpf ogt, %31, %39 : vector<8x10xf32>
    %41 = arith.select %40, %31, %38 : vector<8x10xi1>, vector<8x10xf32>
    %cst_20 = arith.constant 1.05070102 : f32
    %42 = vector.broadcast %cst_20 : f32 to vector<8x10xf32>
    %43 = arith.mulf %42, %41 : vector<8x10xf32>
    %44 = vector.extract_strided_slice %43 {offsets = [0, 0], sizes = [8, 6], strides = [1, 1]} : vector<8x10xf32> to vector<8x6xf32>
    %45 = vector.extract_strided_slice %43 {offsets = [0, 2], sizes = [8, 6], strides = [1, 1]} : vector<8x10xf32> to vector<8x6xf32>
    %46 = vector.extract_strided_slice %43 {offsets = [0, 4], sizes = [8, 6], strides = [1, 1]} : vector<8x10xf32> to vector<8x6xf32>
    %47 = tpu.concatenate %44, %45, %46 in 0 : vector<8x6xf32>, vector<8x6xf32>, vector<8x6xf32> -> vector<24x6xf32>
    %c0_21 = arith.constant 0 : index
    %c0_22 = arith.constant 0 : index
    %48 = vector.load %arg6[%c0_21, %c0_22] : memref<8x24xf32, #tpu.memory_space<vmem>>, vector<8x24xf32>
    %cst_23 = arith.constant dense<0.000000e+00> : vector<8x6xf32>
    %49 = tpu.matmul %48, %47, %cst_23 {dimension_numbers = #tpu.dot_dimension_numbers<[1], [0], [0], [1], [0, 0, 1, 1], [], []>} : vector<8x24xf32>, vector<24x6xf32>, vector<8x6xf32> -> vector<8x6xf32>
    %c0_24 = arith.constant 0 : index
    %c0_25 = arith.constant 0 : index
    %50 = vector.load %arg7[%c0_24, %c0_25] : memref<8x1xf32, #tpu.memory_space<vmem>>, vector<8x1xf32>
    %51 = vector.broadcast %50 : vector<8x1xf32> to vector<8x6xf32>
    %52 = arith.addf %49, %51 : vector<8x6xf32>
    %cst_26 = arith.constant 0.000000e+00 : f32
    %53 = vector.broadcast %cst_26 : f32 to vector<8x6xf32>
    %54 = arith.minimumf %52, %53 : vector<8x6xf32>
    %55 = math.exp %54 : vector<8x6xf32>
    %cst_27 = arith.constant 1.000000e+00 : f32
    %56 = vector.broadcast %cst_27 : f32 to vector<8x6xf32>
    %57 = arith.subf %55, %56 : vector<8x6xf32>
    %cst_28 = arith.constant 1.67326319 : f32
    %58 = vector.broadcast %cst_28 : f32 to vector<8x6xf32>
    %59 = arith.mulf %58, %57 : vector<8x6xf32>
    %cst_29 = arith.constant 0.000000e+00 : f32
    %60 = vector.broadcast %cst_29 : f32 to vector<8x6xf32>
    %61 = arith.cmpf ogt, %52, %60 : vector<8x6xf32>
    %62 = arith.select %61, %52, %59 : vector<8x6xi1>, vector<8x6xf32>
    %cst_30 = arith.constant 1.05070102 : f32
    %63 = vector.broadcast %cst_30 : f32 to vector<8x6xf32>
    %64 = arith.mulf %63, %62 : vector<8x6xf32>
    %c0_31 = arith.constant 0 : index
    %c0_32 = arith.constant 0 : index
    %c0_33 = arith.constant 0 : index
    %65 = vector.load %arg8[%c0_31, %c0_32, %c0_33] : memref<1x8x6xf32, #tpu.memory_space<vmem>>, vector<1x8x6xf32>
    %66 = vector.shape_cast %65 : vector<1x8x6xf32> to vector<8x6xf32>
    %67 = vector.shape_cast %64 : vector<8x6xf32> to vector<1x8x6xf32>
    tpu.vector_store %arg8[%c0_31, %c0_32, %c0_33], %67 {strides = array<i32>} : memref<1x8x6xf32, #tpu.memory_space<vmem>>, vector<1x8x6xf32>,
    return
  }
  func.func @transform_0(%arg0: i32) -> (i32, i32, i32) {
    %c0_i32 = arith.constant 0 : i32
    %c0_i32_0 = arith.constant 0 : i32
    %c0_i32_1 = arith.constant 0 : i32
    return %arg0, %c0_i32, %c0_i32_0 : i32, i32, i32
  }
  func.func @transform_1(%arg0: i32) -> (i32, i32) {
    %c0_i32 = arith.constant 0 : i32
    %c0_i32_0 = arith.constant 0 : i32
    %c0_i32_1 = arith.constant 0 : i32
    return %c0_i32, %c0_i32_0 : i32, i32
  }
  func.func @transform_2(%arg0: i32) -> (i32, i32) {
    %c0_i32 = arith.constant 0 : i32
    %c0_i32_0 = arith.constant 0 : i32
    %c0_i32_1 = arith.constant 0 : i32
    return %c0_i32, %c0_i32_0 : i32, i32
  }
  func.func @transform_3(%arg0: i32) -> (i32, i32) {
    %c0_i32 = arith.constant 0 : i32
    %c0_i32_0 = arith.constant 0 : i32
    %c0_i32_1 = arith.constant 0 : i32
    return %c0_i32, %c0_i32_0 : i32, i32
  }
  func.func @transform_4(%arg0: i32) -> (i32, i32) {
    %c0_i32 = arith.constant 0 : i32
    %c0_i32_0 = arith.constant 0 : i32
    %c0_i32_1 = arith.constant 0 : i32
    return %c0_i32, %c0_i32_0 : i32, i32
  }
  func.func @transform_5(%arg0: i32) -> (i32, i32) {
    %c0_i32 = arith.constant 0 : i32
    %c0_i32_0 = arith.constant 0 : i32
    %c0_i32_1 = arith.constant 0 : i32
    return %c0_i32, %c0_i32_0 : i32, i32
  }
  func.func @transform_6(%arg0: i32) -> (i32, i32) {
    %c0_i32 = arith.constant 0 : i32
    %c0_i32_0 = arith.constant 0 : i32
    %c0_i32_1 = arith.constant 0 : i32
    return %c0_i32, %c0_i32_0 : i32, i32
  }
  func.func @transform_7(%arg0: i32) -> (i32, i32, i32) {
    %c0_i32 = arith.constant 0 : i32
    %c0_i32_0 = arith.constant 0 : i32
    %c0_i32_1 = arith.constant 0 : i32
    return %arg0, %c0_i32, %c0_i32_0 : i32, i32, i32
  }
}

</mosaic_0001>

<bundles_post_ra>
// kernel: tpu_custom_call.1
= control target key start
LH: loop header
LB: loop body
LE: loop exit
PB: predicated region body
PF: predicated region fallthrough
CT: control target
= control target key end

     0   :  { %s763_s24 = smov 0   ;;  %s815_s0 = inlined_call_operand.vmem [shape: f32[2,4,16], index: 0, kind: input, shape index: {}]   ;;  %s816_s1 = inlined_call_operand.vmem [shape: f32[8,12], index: 1, kind: input, shape index: {}]   ;;  %s817_s2 = inlined_call_operand.vmem [shape: f32[8,1], index: 2, kind: input, shape index: {}]   ;;  %s818_s3 = inlined_call_operand.vmem [shape: f32[8,24], index: 3, kind: input, shape index: {}]   ;;  %s819_s4 = inlined_call_operand.vmem [shape: f32[8,1], index: 4, kind: input, shape index: {}]   ;;  %s820_s5 = inlined_call_operand.vmem [shape: f32[8,24], index: 5, kind: input, shape index: {}]   ;;  %s821_s6 = inlined_call_operand.vmem [shape: f32[8,1], index: 6, kind: input, shape index: {}]   ;;  %s822_s7 = inlined_call_operand.vmem [shape: f32[2,8,6], index: 7, kind: output, shape index: {}]  }
   0x1 LB: > { %s621_s25 = sadd.s32 4294967295, %s713_s24   ;;  %p625_p0 = scmp.ge.s32.totalorder %s713_s24, 1  ;;  %s713_s24 = sphi %s763_s24, %s17_s24  }
   0x2   : > { %p236_p1 = scmp.lt.s32.totalorder %s713_s24, 3 }
   0x4   : > { %p237_p2 = pnand %p625_p0, %p236_p1 }
   0x5   : > { %p266_p3 = scmp.lt.s32.totalorder (!%p237_p2), %s621_s25, 1  ;;  %v715_v0 = vmov (!%p237_p2), 0.0|0.0   ;;  %vm716_vm0 = vmmov (!%p237_p2), 0   ;;  %v717_v1 = vmov (!%p237_p2), 0.0   ;;  %v285_v2 = vld [vmem:[%s817_s2] sm:$0xff] (!%p237_p2)  ;;  %v718_v4 = vmov (!%p237_p2), 0  }
   0x6   : > { %240 = sbr.rel (%p237_p2) target bundleno = 1096 (0x448), region = 48  ;;  %673 = vmatprep.subr.bf16.mxu0 (!%p237_p2), %v715_v0  ;;  %677 = vmatprep.subr.bf16.mxu1 (!%p237_p2), %v715_v0  ;;  %s719_s9 = smov (!%p237_p2), 127   ;;  %vm282_vm1 = vcmask (!%p237_p2), 1043456   ;;  %vm721_vm2 = vmmov (!%p237_p2), 1   ;;  %v284_v10 = vld [vmem:[%s816_s1] sm:$0xff] (!%p237_p2)  ;;  %vm291_vm4 = vcmask (!%p237_p2), 97280  }
   0x7   : > { %652 = vmatprep.mubr.msk.f32.mxu0 (!%p237_p2), %vm716_vm0, %v717_v1  ;;  %661 = vmatprep.mubr.msk.f32.mxu1 (!%p237_p2), %vm716_vm0, %v717_v1  ;;  %s720_s10 = smov (!%p237_p2), 126   ;;  %vm675_vm3 = vmpackc.low (!%p237_p2), %vm282_vm1, %vm721_vm2  ;;  %s722_s13 = smov (!%p237_p2), 124   ;;  %v383_v22 = vld [vmem:[%s819_s4] sm:$0xff] (!%p237_p2)  ;;  %vm389_vm6 = vcmask (!%p237_p2), 195584   ;;  %vm566_vm9 = vcmask (!%p237_p2), 48128  }
   0x8   : > { %699 = vset.pattern.permute.xlu1 (!%p237_p2), %v718_v4  ;;  %700 = vset.pattern.permute.xlu0 (!%p237_p2), %v718_v4  ;;  %v382_v25 = vld [vmem:[%s818_s3] sm:$0xff] (!%p237_p2) }
   0x9   : > { %288 = vperm.xlu1 (!%p237_p2), %699, %v285_v2   ;;  %v479_v38 = vld [vmem:[%s821_s6] sm:$0xff] (!%p237_p2) }
   0xa   : > { %v478_v41 = vld [vmem:[%s820_s5] sm:$0xff] (!%p237_p2) }
   0xd   : > { %s824_s25 = smov (!%p266_p3, %s621_s25), 1 }
   0xe   : > { %s626_s26 = sshll.u32 %s824_s25, 2  ;;  %s627_s22 = sshll.u32 %s824_s25, 3 }
   0xf   : > { %s269_s29 = scalar_lea.vmem %s815_s0, %s626_s26  ;;  %s273_s27 = scalar_lea.vmem %s822_s7, %s627_s22 }
  0x10   : > { %v274_v3 = vld [vmem:[%s269_s29] sm:$0xf] }
  0x11   : > { %v276_v5 = vrot.slane %v274_v3, 4 }
  0x13   : > { %277 = vrot.lane.b32.xlu0 %v276_v5, %s719_s9 }
  0x17   : > { %280 = vrot.lane.b32.xlu0 %v274_v3, %s720_s10 }
  0x85   : > { %v278_v6 = vpop.permute.xlu0 %277 }
  0x86   : > { %v283_v7 = vsel %vm282_vm1, %v274_v3, %v278_v6 }
  0x88   : > { %v289_v11 = vpop.permute.xlu1 %288 }
  0x89   : > { %v281_v8 = vpop.permute.xlu0 %280 }
  0x8a   : > { %v674_v9 = vpack.c.bf16 %v281_v8, %v283_v7 }
  0x8c   : > { %676 = vmatpush3.bf16.msk.msra.mxu0 %vm675_vm3, %v674_v9 }
  0x8d   : > { %680 = vmatprep.subr.bf16.mxu0 %v715_v0 }
  0x8f   : > { %653 = vmatmul.mubr.msk.f32.vlgmr.msra.gmra.mrb[0].mxu0 %vm291_vm4, %v284_v10 }
  0x90   : > { %670 = vmatprep.mubr.msk.f32.mxu0 %vm716_vm0, %v717_v1 }
 0x162   : > { %v363_v12 = vpop.f32.mrb[0].mxu0 }
 0x163   : > { %v364_v13 = vadd.f32 %v363_v12, %v289_v11  ;;  %v654_v14 = vpop.f32.mrb[1].mxu0 }
 0x165   : > { %v367_v15 = vmin.f32 %v364_v13, 0.0  ;;  %vm372_vm5 = vcmp.gt.f32.partialorder %v364_v13, 0.0 }
 0x167   : > { %v368_v16 = vmul.f32 1.442695, %v367_v15 }
 0x169   : > { %701 = vpow2.f32 %v368_v16 }
 0x173   : > { %v702_v17 = vpop.eup %701 }
 0x174   : > { %v630_v18 = vadd.f32 -1.0, %v702_v17 }
 0x176   : > { %v371_v19 = vmul.f32 1.6732632, %v630_v18 }
 0x178   : > { %v373_v20 = vsel %vm372_vm5, %v364_v13, %v371_v19 }
 0x179   : > { %v374_v21 = vmul.f32 1.050701, %v373_v20 }
 0x17b   : > { %379 = vrot.lane.b32.xlu0 %v374_v21, %s722_s13  ;;  %376 = vrot.lane.b32.xlu1 %v374_v21, %s720_s10 }
 0x17f   : > { %386 = vperm.xlu1 %699, %v383_v22  }
 0x1ed   : > { %v377_v23 = vpop.permute.xlu1 %376  ;;  %v380_v26 = vpop.permute.xlu0 %379 }
 0x1ee   : > { %v678_v24 = vpack.c.bf16 %v377_v23, %v374_v21 }
 0x1f0   : > { %679 = vmatpush3.bf16.msra.mxu1 %v678_v24 }
 0x1f1   : > { %659 = vmatprep.subr.mxu1 %v717_v1 }
 0x1f4   : > { %660 = vmatpush3.msra.mxu1 %v380_v26 }
 0x1f5   : > { %662 = vmatmul.mubr.msk.f32.vlgmr.msra.gmra.mrb[0].mxu1 %vm389_vm6, %v382_v25 }
 0x1fe   : > { %v387_v27 = vpop.permute.xlu1 %386 }
 0x2c8   : > { %v459_v28 = vpop.f32.mrb[0].mxu1 }
 0x2c9   : > { %v460_v29 = vadd.f32 %v459_v28, %v387_v27  ;;  %v663_v30 = vpop.f32.mrb[1].mxu1 }
 0x2cb   : > { %v463_v31 = vmin.f32 %v460_v29, 0.0  ;;  %vm468_vm7 = vcmp.gt.f32.partialorder %v460_v29, 0.0 }
 0x2cd   : > { %v464_v32 = vmul.f32 1.442695, %v463_v31 }
 0x2cf   : > { %703 = vpow2.f32 %v464_v32 }
 0x2d9   : > { %v704_v33 = vpop.eup %703 }
 0x2da   : > { %v632_v34 = vadd.f32 -1.0, %v704_v33 }
 0x2dc   : > { %v467_v35 = vmul.f32 1.6732632, %v632_v34 }
 0x2de   : > { %v469_v36 = vsel %vm468_vm7, %v460_v29, %v467_v35 }
 0x2df   : > { %v470_v37 = vmul.f32 1.050701, %v469_v36 }
 0x2e1   : > { %475 = vrot.lane.b32.xlu1 %v470_v37, %s722_s13  ;;  %472 = vrot.lane.b32.xlu0 %v470_v37, %s720_s10 }
 0x2e5   : > { %482 = vperm.xlu0 %700, %v479_v38  }
 0x353   : > { %v473_v39 = vpop.permute.xlu0 %472  ;;  %v476_v42 = vpop.permute.xlu1 %475 }
 0x354   : > { %v681_v40 = vpack.c.bf16 %v473_v39, %v470_v37 }
 0x356   : > { %682 = vmatpush3.bf16.msra.mxu0 %v681_v40 }
 0x357   : > { %668 = vmatprep.subr.mxu0 %v717_v1 }
 0x35a   : > { %669 = vmatpush3.msra.mxu0 %v476_v42 }
 0x35b   : > { %671 = vmatmul.mubr.msk.f32.vlgmr.msra.gmra.mrb[2].mxu0 %vm389_vm6, %v478_v41 }
 0x364   : > { %v483_v43 = vpop.permute.xlu0 %482 }
 0x42e   : > { %v554_v44 = vpop.f32.mrb[2].mxu0 }
 0x42f   : > { %v555_v45 = vadd.f32 %v554_v44, %v483_v43  ;;  %v672_v46 = vpop.f32.mrb[3].mxu0 }
 0x431   : > { %v558_v47 = vmin.f32 %v555_v45, 0.0  ;;  %vm563_vm8 = vcmp.gt.f32.partialorder %v555_v45, 0.0 }
 0x433   : > { %v559_v48 = vmul.f32 1.442695, %v558_v47 }
 0x435   : > { %705 = vpow2.f32 %v559_v48 }
 0x43f   : > { %v706_v49 = vpop.eup %705 }
 0x440   : > { %v634_v50 = vadd.f32 -1.0, %v706_v49 }
 0x442   : > { %v562_v51 = vmul.f32 1.6732632, %v634_v50 }
 0x444   : > { %v564_v52 = vsel %vm563_vm8, %v555_v45, %v562_v51 }
 0x445   : > { %v565_v53 = vmul.f32 1.050701, %v564_v52 }
 0x447   : > { %567 = vst.msk [vmem:[%s273_s27] sm:$0xff] %vm566_vm9, %v565_v53 }
 0x448 PF: > { %s17_s24 = sadd.s32 1, %s713_s24  }
 0x449   : > { %p14_p4 = scmp.ge.s32.totalorder %s17_s24, 4  }
 0x44b   :  { %16 = sbr.rel (!%p14_p4) target bundleno = 1 (0x1), region = 78 }

</bundles_post_ra>
